<compile_context>
chip_gen: v7x
topology: tpu7x:2x2x1
jax: 0.10.0
libtpu: 0.0.40
codegen_flags: <defaults>
</compile_context>

<pallas_src>
import functools
import numbers

import jax
import jax.numpy as jnp
from jax import lax
from jax.experimental import pallas as pl
from jax.experimental.pallas import tpu as pltpu


LANES = 128
TARGET_BLOCK_BYTES = 4 * 1024 * 1024      # ~4 MiB per block (per input / output)
VMEM_LIMIT_BYTES = 32 * 1024 * 1024       # safe on v5e/v6e (128 MiB) and v7x (64 MiB)
MAX_INTEGER_POW = 32                      # specialize |z|**n for small static ints


# --------------------------------------------------------------------------- #
# Kernels
# --------------------------------------------------------------------------- #
def _pow_static(z, two_shape):
    """|z| ** two_shape with a *static* Python-float exponent."""
    n = int(round(two_shape))
    if abs(two_shape - n) < 1e-12 and 0 <= n <= MAX_INTEGER_POW:
        if n % 2 == 0:
            # Even exponent: |z|**n == z**n, abs not needed.  VPU-only.
            return lax.integer_pow(z, n)
        return lax.integer_pow(jnp.abs(z), n)
    # Generic (non-integer) exponent: log/exp on the EUP slot.
    return jnp.abs(z) ** jnp.float32(two_shape)


def _bell_kernel_static(x_ref, o_ref, *, center, inv_width, two_shape):
    x = x_ref[...].astype(jnp.float32)
    z = (x - center) * inv_width
    p = _pow_static(z, two_shape)
    o_ref[...] = (1.0 / (1.0 + p)).astype(o_ref.dtype)


def _bell_kernel_dynamic(params_ref, x_ref, o_ref):
    # params_ref (SMEM): [center, 1/width, 2*shape] -- runtime (traced) params.
    center = params_ref[0]
    inv_width = params_ref[1]
    two_shape = params_ref[2]
    x = x_ref[...].astype(jnp.float32)
    z = (x - center) * inv_width
    p = jnp.abs(z) ** two_shape
    o_ref[...] = (1.0 / (1.0 + p)).astype(o_ref.dtype)


# --------------------------------------------------------------------------- #
# Tiling helpers
# --------------------------------------------------------------------------- #
def _round_up(n, m):
    return ((n + m - 1) // m) * m


def _pick_rows_block(rows, itemsize):
    """Row-block size for a (rows, 128) slab: big blocks, but >= 2 grid steps."""
    max_rows = max(8, TARGET_BLOCK_BYTES // (LANES * itemsize))
    if rows < 16:
        return rows                      # tiny: full-extent block (grid of 1)
    if rows <= max_rows:
        # Split into >= 2 grid steps so both v7x TensorCores get work.
        return min(max_rows, _round_up(pl.cdiv(rows, 2), 8))
    return max_rows


def _compiler_params():
    return pltpu.CompilerParams(
        dimension_semantics=("parallel",),
        vmem_limit_bytes=VMEM_LIMIT_BYTES,
    )


def _run_2d(kernel, extra_args, extra_specs, x2d, out_dtype):
    rows, lanes = x2d.shape
    r_block = _pick_rows_block(rows, jnp.dtype(x2d.dtype).itemsize)
    grid = (pl.cdiv(rows, r_block),)
    return pl.pallas_call(
        kernel,
        out_shape=jax.ShapeDtypeStruct((rows, lanes), out_dtype),
        grid_spec=pltpu.PrefetchScalarGridSpec(
            num_scalar_prefetch=0,
            grid=grid,
            in_specs=list(extra_specs)
            + [pl.BlockSpec((r_block, lanes), lambda i: (i, 0))],
            out_specs=pl.BlockSpec((r_block, lanes), lambda i: (i, 0)),
        ),
        compiler_params=_compiler_params(),
    )(*extra_args, x2d)


def _run_1d(kernel, extra_args, extra_specs, xf, out_dtype):
    total = xf.shape[0]
    rows = pl.cdiv(total, LANES)
    blk = _pick_rows_block(rows, jnp.dtype(xf.dtype).itemsize) * LANES
    grid = (pl.cdiv(total, blk),)
    return pl.pallas_call(
        kernel,
        out_shape=jax.ShapeDtypeStruct((total,), out_dtype),
        grid_spec=pltpu.PrefetchScalarGridSpec(
            num_scalar_prefetch=0,
            grid=grid,
            in_specs=list(extra_specs) + [pl.BlockSpec((blk,), lambda i: (i,))],
            out_specs=pl.BlockSpec((blk,), lambda i: (i,)),
        ),
        compiler_params=_compiler_params(),
    )(*extra_args, xf)


# --------------------------------------------------------------------------- #
# Public wrapper (forward pass of the Bell module)
# --------------------------------------------------------------------------- #
def bell_forward(x, center, width, shape):
    """Elementwise generalized-bell membership function via Pallas.

    x: any-shaped float array (e.g. NCHW [B, C, H, W]).
    center, width, shape: learnable scalar parameters (Python floats here).
    """
    orig_shape = x.shape
    orig_dtype = x.dtype
    total = x.size

    static_params = all(
        isinstance(p, numbers.Number) for p in (center, width, shape)
    )
    if static_params:
        kernel = functools.partial(
            _bell_kernel_static,
            center=float(center),
            inv_width=1.0 / float(width),
            two_shape=2.0 * float(shape),
        )
        extra_args, extra_specs = (), ()
    else:
        # Runtime (traced) parameters: pass [center, 1/width, 2*shape] via SMEM.
        params = jnp.stack(
            [jnp.asarray(center, jnp.float32),
             1.0 / jnp.asarray(width, jnp.float32),
             2.0 * jnp.asarray(shape, jnp.float32)]
        )
        kernel = _bell_kernel_dynamic
        extra_args = (params,)
        extra_specs = (pl.BlockSpec(memory_space=pltpu.MemorySpace.SMEM),)

    if total % LANES == 0:
        # Lane-dense 2-D path: no pad, no slice.
        rows = total // LANES
        out2d = _run_2d(kernel, extra_args, extra_specs,
                        x.reshape(rows, LANES), orig_dtype)
        return out2d.reshape(orig_shape)

    if total >= 16 * LANES:
        # Large ragged total: masked 1-D grid, still no pad/slice HBM passes.
        outf = _run_1d(kernel, extra_args, extra_specs,
                       x.reshape(total), orig_dtype)
        return outf.reshape(orig_shape)

    # Tiny ragged total (< 2048 elems): pad/slice cost is negligible here.
    pad = (-total) % LANES
    xf = jnp.pad(x.reshape(-1), (0, pad))
    rows = xf.size // LANES
    out2d = _run_2d(kernel, extra_args, extra_specs,
                    xf.reshape(rows, LANES), orig_dtype)
    return out2d.reshape(-1)[:total].reshape(orig_shape)


def bell_reference(x, center, width, shape):
    """Pure-JAX reference, mirrors the torch module op-for-op."""
    z = (x.astype(jnp.float32) - center) / width
    p = jnp.abs(z) ** (2.0 * shape)
    return (1.0 / (1.0 + p)).astype(x.dtype)


# --------------------------------------------------------------------------- #
# Self-test
# --------------------------------------------------------------------------- #
if __name__ == "__main__":
    k0, k1, k2 = jax.random.split(jax.random.PRNGKey(0), 3)
    center, width, shape = 0.5, 1.5, 2.0

    def check(x, c, w, s):
        out = jax.block_until_ready(bell_forward(x, c, w, s))
        ref = bell_reference(x, c, w, s)
        assert out.shape == x.shape and out.dtype == x.dtype
        assert jnp.allclose(out, ref, atol=1e-5, rtol=1e-5), "mismatch vs reference"

    # Main case: NCHW input, 128-aligned total -> 2-D path, 2 parallel grid steps.
    x = jax.random.normal(k0, (2, 4, 16, 16), dtype=jnp.float32)
    check(x, center, width, shape)

    # Non-integer exponent (static generic-pow path) on the same aligned layout.
    check(x, center, width, 1.25)

    # Large ragged total (2229 elems): masked 1-D grid path, no pad/slice.
    x_ragged = jax.random.normal(k1, (3, 743), dtype=jnp.float32)
    check(x_ragged, center, width, shape)

    # Tiny ragged total (35 elems): pad fallback path.
    x_tiny = jax.random.normal(k2, (5, 7), dtype=jnp.float32)
    check(x_tiny, center, width, shape)

    print("KERNEL_OK")
</pallas_src>

<mosaic_0001>
module attributes {stable_mosaic.version = 11 : i64} {
  func.func @_bell_kernel_static(%arg0: i32, %arg1: memref<8x128xf32, #tpu.memory_space<vmem>>, %arg2: memref<8x128xf32, #tpu.memory_space<vmem>>) attributes {dimension_semantics = [#tpu.dimension_semantics<parallel>], iteration_bounds = array<i64: 2>, scalar_prefetch = 0 : i64, scratch_operands = 0 : i64, tpu.core_type = #tpu.core_type<tc>, window_params = [{transform_indices = @transform_0, window_bounds = array<i64: 8, 128>}, {transform_indices = @transform_1, window_bounds = array<i64: 8, 128>}]} {
    %c0 = arith.constant 0 : index
    %c0_0 = arith.constant 0 : index
    %0 = vector.load %arg1[%c0, %c0_0] : memref<8x128xf32, #tpu.memory_space<vmem>>, vector<8x128xf32>
    %cst = arith.constant 5.000000e-01 : f32
    %1 = vector.broadcast %cst : f32 to vector<8x128xf32>
    %2 = arith.subf %0, %1 : vector<8x128xf32>
    %cst_1 = arith.constant 0.666666686 : f32
    %3 = vector.broadcast %cst_1 : f32 to vector<8x128xf32>
    %4 = arith.mulf %2, %3 : vector<8x128xf32>
    %5 = arith.mulf %4, %4 : vector<8x128xf32>
    %6 = arith.mulf %5, %5 : vector<8x128xf32>
    %cst_2 = arith.constant 1.000000e+00 : f32
    %7 = vector.broadcast %cst_2 : f32 to vector<8x128xf32>
    %8 = arith.addf %7, %6 : vector<8x128xf32>
    %cst_3 = arith.constant 1.000000e+00 : f32
    %9 = vector.broadcast %cst_3 : f32 to vector<8x128xf32>
    %10 = arith.divf %9, %8 : vector<8x128xf32>
    %c0_4 = arith.constant 0 : index
    %c0_5 = arith.constant 0 : index
    %11 = vector.load %arg2[%c0_4, %c0_5] : memref<8x128xf32, #tpu.memory_space<vmem>>, vector<8x128xf32>
    tpu.vector_store %arg2[%c0_4, %c0_5], %10 {strides = array<i32>} : memref<8x128xf32, #tpu.memory_space<vmem>>, vector<8x128xf32>,
    return
  }
  func.func @transform_0(%arg0: i32) -> (i32, i32) {
    %c0_i32 = arith.constant 0 : i32
    %c0_i32_0 = arith.constant 0 : i32
    return %arg0, %c0_i32 : i32, i32
  }
  func.func @transform_1(%arg0: i32) -> (i32, i32) {
    %c0_i32 = arith.constant 0 : i32
    %c0_i32_0 = arith.constant 0 : i32
    return %arg0, %c0_i32 : i32, i32
  }
}

</mosaic_0001>

<bundles_post_ra>
// kernel: tpu_custom_call.1
= control target key start
LH: loop header
LB: loop body
LE: loop exit
PB: predicated region body
PF: predicated region fallthrough
CT: control target
= control target key end

     0   :  { %6 = vsyncpa [#allocation3], 0  ;;  %s557_s0 = inlined_call_operand.hbm [shape: f32[16,128], index: 0, kind: input, shape index: {}]   ;;  %s558_s1 = inlined_call_operand.hbm [shape: f32[16,128], index: 1, kind: output, shape index: {}]  }
   0x1   :  { %8 = vsyncpa [#allocation3 + $0x1], 0 }
   0x2   :  { %9 = vsyncpa [#allocation4], 0 }
   0x3   :  { %11 = vsyncpa [#allocation4 + $0x1], 0  ;;  %s396_s6 = smov 0   ;;  %s398_s7 = smov 0  }
   0x4   :  { %s400_s8 = smov 0   ;;  %s402_s9 = smov 0  }
   0x5 LB: > { %s417_s10 = sadd.s32 4294967295, %s382_s9   ;;  %s225_s11 = sadd.s32 4294967294, %s382_s9   ;;  %s382_s9 = sphi %s402_s9, %s573_s9   ;;  %s378_s8 = sphi %s400_s8, %s572_s8   ;;  %s374_s7 = sphi %s398_s7, %s571_s7   ;;  %s370_s6 = sphi %s396_s6, %s570_s6  }
   0x6   : > { %s421_s12 = sadd.s32 1, %s382_s9   ;;  %s24_s13 = sadd.s32 1, %s378_s8 }
   0x7   : > { %s21_s14 = ssub.s32 %s382_s9, %s421_s12  ;;  %p31_p0 = scmp.ne.s32.totalorder %s378_s8, %s374_s7 }
   0x8   : > { %p22_p1 = scmp.eq.s32.totalorder %s21_s14, 0  ;;  %p32_p2 = scmp.eq.s32.totalorder %s382_s9, 0 }
   0x9   : > { %p37_p3 = scmp.ne.s32.totalorder %s374_s7, %s370_s6  ;;  %p38_p4 = scmp.eq.s32.totalorder %s417_s10, 0 }
   0xa   : > { %s433_s15 = scalar_select %p22_p1, %s378_s8, %s24_s13  }
   0xb   : > { %p435_p5 = por %p32_p2, %p31_p0  ;;  %p439_p6 = por %p38_p4, %p37_p3 }
   0xc   : > { %p61_p7 = scmp.eq.s32.totalorder %s417_s10, 1  ;;  %p67_p8 = scmp.eq.s32.totalorder %s225_s11, 1 }
   0xd   : > { %p250_p10 = scmp.lt.s32.totalorder %s382_s9, 2  ;;  %s87_s20 = sand.u32 1, %s378_s8  }
   0xe   : > { %p446_p11 = por %p61_p7, %p31_p0  ;;  %p450_p12 = por %p67_p8, %p37_p3 }
   0xf   : > { %s229_s21 = sshll.u32 %s382_s9, 7  ;;  %s228_s22 = sshll.u32 %s87_s20, 3 }
  0x10   : > { %s562_s18 = scalar_select %p446_p11, 1, 0 }
  0x11   : > { %s563_s19 = scalar_select %p450_p12, 1, 0 }
  0x12   : > { %s459_s25 = scalar_lea.hbm %s557_s0, %s229_s21  ;;  %s91_s26 = scalar_lea.vmem [#allocation2], %s228_s22 }
  0x13   : > { %s98_s27 = sshll.u32 %s91_s26, 4  ;;  %p463_p13 = pnand %p250_p10, %p435_p5  ;;  %s467_s27 = int_to_ptr.vmem [resolvable:$true] %s98_s27 }
  0x14   : > { %s88_s29 = scalar_lea.sflag [#allocation3], %s87_s20  ;;  %s286_s30 = scalar_lea.hbm %s459_s25, 128 }
  0x15   : > { %p287_p2 = scmp.ne.s32.totalorder %s459_s25, %s286_s30  ;;  %p288_p3 = pneg %p463_p13 }
  0x16   : > { %s291_s4 = scalar_lea.hbm %s557_s0, 256  ;;  %p292_p5 = scmp.lt.u32.totalorder %s459_s25, %s557_s0 }
  0x17   : > { %p289_p4 = pnand %p288_p3, %p287_p2  ;;  %p293_p8 = scmp.lt.u32.totalorder %s291_s4, %s286_s30 }
  0x18   : > { %p295_p9 = scmp.lt.u32.totalorder %s286_s30, %s459_s25 }
  0x19   : > { %p290_p7 = pneg %p289_p4  ;;  %p294_p10 = por %p293_p8, %p292_p5 }
  0x1b   : > { %p296_p0 = por %p295_p9, %p294_p10 }
  0x1d   : > { %p297_p1 = pnand %p296_p0, %p290_p7 }
  0x1f   : > { %300 = shalt.err (!%p297_p1)
}
  0x20   : > { %s301_s13 = scalar_lea.vmem %s467_s27, 128  ;;  %s384_s14 = smov [#allocation2]  }
  0x21   : > { %p302_p2 = scmp.ne.s32.totalorder %s467_s27, %s301_s13  ;;  %s306_s16 = sshll.u32 %s384_s14, 4  ;;  %s307_s16 = int_to_ptr.vmem [resolvable:$false] %s306_s16 }
  0x22   : > { %s308_s20 = scalar_lea.vmem %s307_s16, 256  ;;  %p309_p11 = scmp.lt.s32.totalorder %s467_s27, %s307_s16 }
  0x23   : > { %p304_p4 = pnand %p302_p2, %p288_p3  ;;  %p310_p5 = scmp.lt.s32.totalorder %s308_s20, %s301_s13 }
  0x25   : > { %p305_p12 = pneg %p304_p4  ;;  %p311_p8 = por %p310_p5, %p309_p11 }
  0x27   : > { %p312_p9 = pnand %p311_p8, %p305_p12 }
  0x29   : > { %315 = shalt.err (!%p312_p9)
}
  0x2a   : > { %245 = dma.hbm_to_vmem [thread:$0]  (!%p463_p13), %s459_s25, 128, %s467_s27, %s88_s29  }
  0x2b   : > { %p565_p0 = scmp.lt.s32.totalorder %s382_s9, 3  ;;  %p566_p1 = scmp.ge.s32.totalorder %s382_s9, 1 }
  0x2d   : > { %p104_p3 = pnand %p566_p1, %p565_p0 }
  0x2e   : > { %s501_s21 = sand.u32 (!%p104_p3), 1, %s374_s7  }
  0x2f   : > { %107 = sbr.rel (%p104_p3) target bundleno = 91 (0x5b), region = 24  ;;  %s231_s22 = sshll.u32 (!%p104_p3), %s501_s21, 3 }
  0x30   : > { %s110_s23 = scalar_lea.sflag (!%p104_p3), [#allocation3], %s501_s21  ;;  %s113_s24 = scalar_lea.vmem (!%p104_p3), [#allocation2], %s231_s22 }
  0x36   : > { %361 = dma.done.wait (%p439_p6), %s110_s23, 128  }
  0x37   : > { %363 = vsyncadd (%p439_p6), %s110_s23, 4294967168  ;;  %v132_v0 = vld [vmem:[%s113_s24] sm:$0xff]  ;;  %s131_s25 = scalar_lea.vmem [#allocation5], %s231_s22  ;;  %s235_s27 = sshll.u32 %s417_s10, 7 }
  0x38   : > { %v233_v1 = vadd.f32 -0.5, %v132_v0  ;;  %s155_s26 = sshll.u32 %s131_s25, 4  ;;  %s515_s17 = scalar_lea.hbm %s558_s1, %s235_s27  ;;  %s510_s26 = int_to_ptr.vmem [resolvable:$true] %s155_s26 }
  0x39   : > { %s142_s30 = scalar_lea.sflag [#allocation4], %s501_s21  ;;  %s316_s2 = scalar_lea.vmem %s510_s26, 128 }
  0x3a   : > { %v134_v2 = vmul.f32 0.6666667, %v233_v1  ;;  %p317_p6 = scmp.ne.s32.totalorder %s510_s26, %s316_s2  ;;  %p567_p11 = scmp.ne.s32.totalorder %s562_s18, 0 }
  0x3b   : > { %s385_s3 = smov [#allocation5]  }
  0x3c   : > { %v135_v3 = vmul.f32 %v134_v2, %v134_v2  ;;  %p318_p12 = pnand %p317_p6, %p567_p11  ;;  %s320_s10 = sshll.u32 %s385_s3, 4  ;;  %s321_s10 = int_to_ptr.vmem [resolvable:$false] %s320_s10 }
  0x3d   : > { %s322_s4 = scalar_lea.vmem %s321_s10, 256  ;;  %p323_p7 = scmp.lt.s32.totalorder %s510_s26, %s321_s10 }
  0x3e   : > { %v136_v4 = vmul.f32 %v135_v3, %v135_v3  ;;  %p319_p13 = pneg %p318_p12  ;;  %p324_p10 = scmp.lt.s32.totalorder %s322_s4, %s316_s2 }
  0x40   : > { %v137_v5 = vadd.f32 1.0, %v136_v4  ;;  %p325_p2 = por %p324_p10, %p323_p7 }
  0x42   : > { %284 = vrcp.f32 %v137_v5  ;;  %p326_p4 = pnand %p325_p2, %p319_p13 }
  0x4c   : > { %v285_v6 = vpop.eup %284 }
  0x4d   : > { %140 = vst [vmem:[%s131_s25] sm:$0xff] %v285_v6 }
  0x4e   : > { %329 = shalt.err (!%p326_p4)
}
  0x4f   : > { %s330_s5 = scalar_lea.hbm %s515_s17, 128  ;;  %s334_s14 = scalar_lea.hbm %s558_s1, 256 }
  0x50   : > { %p331_p5 = scmp.ne.s32.totalorder %s515_s17, %s330_s5  ;;  %p335_p0 = scmp.lt.u32.totalorder %s515_s17, %s558_s1 }
  0x51   : > { %p336_p1 = scmp.lt.u32.totalorder %s334_s14, %s330_s5  ;;  %p338_p6 = scmp.lt.u32.totalorder %s330_s5, %s515_s17 }
  0x52   : > { %p332_p8 = pnand %p331_p5, %p567_p11 }
  0x53   : > { %p337_p3 = por %p336_p1, %p335_p0 }
  0x54   : > { %p333_p9 = pneg %p332_p8 }
  0x55   : > { %p339_p12 = por %p338_p6, %p337_p3 }
  0x57   : > { %p340_p13 = pnand %p339_p12, %p333_p9 }
  0x59   : > { %343 = shalt.err (!%p340_p13)
}
  0x5a   : > { %240 = dma.vmem_to_hbm [thread:$0]  (%p567_p11), %s510_s26, 128, %s515_s17, %s142_s30  }
  0x5b PF: > { %s167_s21 = sand.u32 1, %s370_s6   ;;  %p568_p7 = scmp.ne.s32.totalorder %s563_s19, 0 }
  0x5c   : > { %p569_p10 = scmp.ge.s32.totalorder %s382_s9, 2  ;;  %s168_s22 = scalar_lea.sflag [#allocation4], %s167_s21 }
  0x5e   : > { %p247_p2 = pnand %p569_p10, %p568_p7 }
  0x60   : > { %365 = dma.done.wait (!%p247_p2), %s168_s22, 128  }
  0x61   : > { %367 = vsyncadd (!%p247_p2), %s168_s22, 4294967168  ;;  %p14_p4 = scmp.ge.s32.totalorder %s421_s12, 4   ;;  %s570_s6 = smov %s374_s7 }
  0x62   : > { %s571_s7 = smov %s378_s8  ;;  %s572_s8 = smov %s433_s15 }
  0x63   : > { %s573_s9 = smov %s421_s12  ;;  %16 = sbr.rel (!%p14_p4) target bundleno = 5 (0x5), region = 69 }
  0x6a   :  { %173 = vsyncpa [#allocation3], 1 }
  0x6b   :  { %175 = vsyncpa [#allocation3 + $0x1], 1 }
  0x6c   :  { %176 = vsyncpa [#allocation4], 1 }
  0x6d   :  { %178 = vsyncpa [#allocation4 + $0x1], 1 }

</bundles_post_ra>
